<compile_context>
chip_gen: v7x
topology: tpu7x:2x2x1
jax: 0.10.0
libtpu: 0.0.40
codegen_flags: <defaults>
</compile_context>

<pallas_src>
import math

import jax
import jax.numpy as jnp
import numpy as np
from jax import lax
from jax.experimental import pallas as pl
from jax.experimental.pallas import tpu as pltpu


def padding_expression(kernel_size, stride, dilation=1):
    # Ceil((dilation*(k-1) - stride + 1) / 2), same as the symbolic version.
    return math.ceil((dilation * (kernel_size - 1) - stride + 1) / 2)


_VMEM = pl.BlockSpec(memory_space=pltpu.MemorySpace.VMEM)


# ------------------------------ fused kernel -------------------------------

def convnet_fused_kernel(xe_ref, xo_ref, t0_ref, t1_ref, b0_ref, b1_ref,
                         wl_ref, bl_ref, o_ref):
    """Whole ConvNet forward in one kernel.

    xe_ref: (B, H/2+1, W*Cin)   even rows of the H-padded input, lanes (w, ci)
    xo_ref: (B, H/2+1, W*Cin)   odd rows of the H-padded input,  lanes (w, ci)
    t0_ref: (3, W*Cin, W*C0)    conv0 banded weight per kh (W-pad folded in)
    t1_ref: (3, W*C0, OW2*C1)   conv1 banded weight per kh (stride-2 + W-pad folded in)
    b0_ref: (1, W*C0)           conv0 bias tiled over w
    b1_ref: (1, OW2*C1)         conv1 bias tiled over ow2
    wl_ref: (OH2*OW2*C1, L)     linear weight permuted to the kernel's flatten order
    bl_ref: (1, L)
    o_ref : (B, L)              logits
    """
    B, HP, K0 = xe_ref.shape       # HP = H/2 + 1
    R = HP - 1                     # rows per parity per batch (= OH2)
    M = B * R                      # matmul M dim (= 16)
    N0 = t0_ref.shape[2]           # W * C0   (= 128, full lanes)
    N1 = t1_ref.shape[2]           # OW2 * C1 (= 128, full lanes)

    def mm(a, w):
        return jnp.dot(a, w, preferred_element_type=jnp.float32)

    xe = xe_ref[...]
    xo = xo_ref[...]

    # Row slabs of the H-padded input (padded row p = h + 1):
    #   xe[i] = padded row 2i, xo[i] = padded row 2i + 1.
    xe_lo = xe[:, 0:R, :].reshape(M, K0)      # padded rows 0,2,...,2R-2
    xe_hi = xe[:, 1:R + 1, :].reshape(M, K0)  # padded rows 2,4,...,2R
    xo_lo = xo[:, 0:R, :].reshape(M, K0)      # padded rows 1,3,...,2R-1
    xo_hi = xo[:, 1:R + 1, :].reshape(M, K0)  # padded rows 3,5,...,2R+1

    # ---- conv0: 3x3 / stride 1 / pad 1, bias + ReLU ----
    # Even output rows h = 2*he need padded rows 2*he + {0,1,2}.
    a0e = mm(xe_lo, t0_ref[0]) + mm(xo_lo, t0_ref[1]) + mm(xe_hi, t0_ref[2])
    # Odd output rows h = 2*ho+1 need padded rows 2*ho+1 + {0,1,2}.
    a0o = mm(xo_lo, t0_ref[0]) + mm(xe_hi, t0_ref[1]) + mm(xo_hi, t0_ref[2])
    a0e = jnp.maximum(a0e + b0_ref[...], 0.0)  # (M, N0) rows (b, 2*he),  lanes (w, c0)
    a0o = jnp.maximum(a0o + b0_ref[...], 0.0)  # (M, N0) rows (b, 2*ho+1)

    # ---- conv1: 3x3 / stride 2 / pad 1, bias + ReLU ----
    # Output row oh2 needs a0 rows 2*oh2 + {-1, 0, +1}:
    #   kh=0 -> odd row oh2-1 (zero-pad at oh2=0), kh=1 -> even row oh2,
    #   kh=2 -> odd row oh2.  W handling (stride 2 + zero pad) lives in t1.
    po = jnp.concatenate(
        [jnp.zeros((B, 1, N0), jnp.float32), a0o.reshape(B, R, N0)], axis=1)  # (B, R+1, N0)
    po_lo = po[:, 0:R, :].reshape(M, N0)
    po_hi = po[:, 1:R + 1, :].reshape(M, N0)
    out1 = mm(po_lo, t1_ref[0]) + mm(a0e, t1_ref[1]) + mm(po_hi, t1_ref[2])
    out1 = jnp.maximum(out1 + b1_ref[...], 0.0)  # (M, N1) rows (b, oh2), lanes (ow2, c1)

    # ---- flatten + linear ----
    # flat[b, oh2*N1 + (ow2*C1 + c1)]: 128-lane-aligned row->lane concat; the
    # linear weight was permuted in the wrapper to exactly this order.
    rows = []
    for b in range(B):
        rows.append(jnp.concatenate(
            [out1[b * R + j: b * R + j + 1, :] for j in range(R)], axis=1))  # (1, R*N1)
    flat = jnp.concatenate(rows, axis=0)                                     # (B, R*N1)
    o_ref[...] = mm(flat, wl_ref[...]) + bl_ref[...]


# ------------------------------ wrapper (glue) ------------------------------

def _conv_toeplitz(w_oihw, in_w, out_w, stride, pad):
    """Banded conv weight: T[kh, w_in*Cin + ci, ow*Cout + co] = w[co,ci,kh,kw]
    where w_in == ow*stride + kw - pad (zero outside), i.e. W-padding and the
    W-stride are folded into the weight so the kernel only matmuls."""
    cout, cin, k, _ = w_oihw.shape
    kw = jnp.arange(k)
    win = jnp.arange(in_w)
    ow = jnp.arange(out_w)
    mask = (win[None, :, None] ==
            ow[None, None, :] * stride + kw[:, None, None] - pad)
    mask = mask.astype(w_oihw.dtype)                         # (k, in_w, out_w)
    w_t = jnp.transpose(w_oihw, (2, 3, 1, 0))                # (kh, kw, ci, co)
    t = jnp.einsum("kwo,hkic->hwioc", mask, w_t)             # (kh, w_in, ci, ow, co)
    return t.reshape(k, in_w * cin, out_w * cout)


def convnet_forward(x_nchw, params):
    (w0, b0, s0), (w1, b1, s1) = params["convs"]
    w_lin, b_lin = params["linear"]

    B, Cin, H, W = x_nchw.shape
    C0 = w0.shape[0]
    C1 = w1.shape[0]
    K = w0.shape[2]
    L = w_lin.shape[0]

    # This kernel is specialized to the chosen search-space point.
    assert s0 == 1 and s1 == 2 and w1.shape[2] == K == 3
    assert padding_expression(K, s0) == 1 and padding_expression(K, s1) == 1
    assert H % 2 == 0 and W % 2 == 0
    OH2, OW2 = H // 2, W // 2
    assert w_lin.shape[1] == C1 * OH2 * OW2

    # Tiny, one-time layout prep (fused by XLA); all heavy work is one kernel.
    x_nhwc = jnp.transpose(x_nchw, (0, 2, 3, 1))             # NCHW -> NHWC
    x_wc = x_nhwc.reshape(B, H, W * Cin)                     # lanes = (w, ci)
    x_pad = jnp.pad(x_wc, ((0, 0), (1, 1), (0, 0)))          # H padding only
    xe = x_pad[:, 0::2, :]                                   # even padded rows
    xo = x_pad[:, 1::2, :]                                   # odd  padded rows

    t0 = _conv_toeplitz(w0, W, W, stride=1, pad=1)           # (3, W*Cin, W*C0)
    t1 = _conv_toeplitz(w1, W, OW2, stride=2, pad=1)         # (3, W*C0, OW2*C1)
    b0t = jnp.tile(b0, W)[None, :]                           # (1, W*C0)
    b1t = jnp.tile(b1, OW2)[None, :]                         # (1, OW2*C1)
    # Permute linear weight from torch NCHW-flatten order (c1*OH2*OW2 + oh2*OW2 + ow2)
    # to the kernel's flatten order (oh2*OW2*C1 + ow2*C1 + c1).
    wl_r = (w_lin.reshape(L, C1, OH2, OW2)
            .transpose(2, 3, 1, 0)
            .reshape(OH2 * OW2 * C1, L))
    blr = b_lin.reshape(1, L)

    return pl.pallas_call(
        convnet_fused_kernel,
        out_shape=jax.ShapeDtypeStruct((B, L), jnp.float32),
        in_specs=[_VMEM] * 8,
        out_specs=_VMEM,
    )(xe, xo, t0, t1, b0t, b1t, wl_r, blr)


# ------------------------- pure-JAX reference check -------------------------

def convnet_ref(x, params):
    out = x
    for (w, b, stride) in params["convs"]:
        k = w.shape[2]
        pad = padding_expression(k, stride)
        out = lax.conv_general_dilated(
            out, w, (stride, stride), [(pad, pad), (pad, pad)],
            dimension_numbers=("NCHW", "OIHW", "NCHW"))
        out = jnp.maximum(out + b[None, :, None, None], 0.0)
    flat = out.reshape(out.shape[0], -1)
    w_lin, b_lin = params["linear"]
    return flat @ w_lin.T + b_lin


if __name__ == "__main__":
    key = jax.random.PRNGKey(0)

    B, C, H, W = 2, 4, 16, 16
    labels = 10
    conv_cfg = [(8, 3, 1), (16, 3, 2)]    # (out_channels, kernel_size, stride)

    keys = jax.random.split(key, 2 * len(conv_cfg) + 3)
    params = {"convs": []}
    cin, h = C, H
    for i, (cout, k, s) in enumerate(conv_cfg):
        fan_in = cin * k * k
        bound = 1.0 / math.sqrt(fan_in)
        w = jax.random.uniform(keys[2 * i], (cout, cin, k, k),
                               jnp.float32, -bound, bound)
        b = jax.random.uniform(keys[2 * i + 1], (cout,),
                               jnp.float32, -bound, bound)
        params["convs"].append((w, b, s))
        cin, h = cout, h // s

    in_features = cin * h * h                                   # 16*8*8 = 1024
    bound = 1.0 / math.sqrt(in_features)
    w_lin = jax.random.uniform(keys[-3], (labels, in_features),
                               jnp.float32, -bound, bound)
    b_lin = jax.random.uniform(keys[-2], (labels,), jnp.float32, -bound, bound)
    params["linear"] = (w_lin, b_lin)

    x = jax.random.normal(keys[-1], (B, C, H, W), jnp.float32)

    out = convnet_forward(x, params)
    out = jax.block_until_ready(out)
    assert out.shape == (B, labels), out.shape

    ref = jax.block_until_ready(convnet_ref(x, params))
    np.testing.assert_allclose(np.asarray(out), np.asarray(ref),
                               rtol=1e-3, atol=1e-3)

    print("KERNEL_OK")
</pallas_src>

<mosaic_0001>
module attributes {stable_mosaic.version = 11 : i64} {
  func.func @convnet_fused_kernel(%arg0: memref<2x9x64xf32, #tpu.memory_space<vmem>>, %arg1: memref<2x9x64xf32, #tpu.memory_space<vmem>>, %arg2: memref<3x64x128xf32, #tpu.memory_space<vmem>>, %arg3: memref<3x128x128xf32, #tpu.memory_space<vmem>>, %arg4: memref<1x128xf32, #tpu.memory_space<vmem>>, %arg5: memref<1x128xf32, #tpu.memory_space<vmem>>, %arg6: memref<1024x10xf32, #tpu.memory_space<vmem>>, %arg7: memref<1x10xf32, #tpu.memory_space<vmem>>, %arg8: memref<2x10xf32, #tpu.memory_space<vmem>>) attributes {dimension_semantics = [], scalar_prefetch = 0 : i64, scratch_operands = 0 : i64, tpu.core_type = #tpu.core_type<tc>} {
    %c0 = arith.constant 0 : index
    %c0_0 = arith.constant 0 : index
    %c0_1 = arith.constant 0 : index
    %0 = vector.load %arg0[%c0, %c0_0, %c0_1] : memref<2x9x64xf32, #tpu.memory_space<vmem>>, vector<2x9x64xf32>
    %c0_2 = arith.constant 0 : index
    %c0_3 = arith.constant 0 : index
    %c0_4 = arith.constant 0 : index
    %1 = vector.load %arg1[%c0_2, %c0_3, %c0_4] : memref<2x9x64xf32, #tpu.memory_space<vmem>>, vector<2x9x64xf32>
    %2 = vector.extract_strided_slice %0 {offsets = [0, 0, 0], sizes = [2, 8, 64], strides = [1, 1, 1]} : vector<2x9x64xf32> to vector<2x8x64xf32>
    %3 = vector.shape_cast %2 : vector<2x8x64xf32> to vector<16x64xf32>
    %4 = vector.extract_strided_slice %0 {offsets = [0, 1, 0], sizes = [2, 8, 64], strides = [1, 1, 1]} : vector<2x9x64xf32> to vector<2x8x64xf32>
    %5 = vector.shape_cast %4 : vector<2x8x64xf32> to vector<16x64xf32>
    %6 = vector.extract_strided_slice %1 {offsets = [0, 0, 0], sizes = [2, 8, 64], strides = [1, 1, 1]} : vector<2x9x64xf32> to vector<2x8x64xf32>
    %7 = vector.shape_cast %6 : vector<2x8x64xf32> to vector<16x64xf32>
    %8 = vector.extract_strided_slice %1 {offsets = [0, 1, 0], sizes = [2, 8, 64], strides = [1, 1, 1]} : vector<2x9x64xf32> to vector<2x8x64xf32>
    %9 = vector.shape_cast %8 : vector<2x8x64xf32> to vector<16x64xf32>
    %c0_5 = arith.constant 0 : index
    %c0_6 = arith.constant 0 : index
    %c0_7 = arith.constant 0 : index
    %10 = vector.load %arg2[%c0_5, %c0_6, %c0_7] : memref<3x64x128xf32, #tpu.memory_space<vmem>>, vector<1x64x128xf32>
    %11 = vector.shape_cast %10 : vector<1x64x128xf32> to vector<64x128xf32>
    %cst = arith.constant dense<0.000000e+00> : vector<16x128xf32>
    %12 = tpu.matmul %3, %11, %cst {dimension_numbers = #tpu.dot_dimension_numbers<[1], [0], [0], [1], [0, 0, 1, 1], [], []>} : vector<16x64xf32>, vector<64x128xf32>, vector<16x128xf32> -> vector<16x128xf32>
    %c1 = arith.constant 1 : index
    %c0_8 = arith.constant 0 : index
    %c0_9 = arith.constant 0 : index
    %13 = vector.load %arg2[%c1, %c0_8, %c0_9] : memref<3x64x128xf32, #tpu.memory_space<vmem>>, vector<1x64x128xf32>
    %14 = vector.shape_cast %13 : vector<1x64x128xf32> to vector<64x128xf32>
    %cst_10 = arith.constant dense<0.000000e+00> : vector<16x128xf32>
    %15 = tpu.matmul %7, %14, %cst_10 {dimension_numbers = #tpu.dot_dimension_numbers<[1], [0], [0], [1], [0, 0, 1, 1], [], []>} : vector<16x64xf32>, vector<64x128xf32>, vector<16x128xf32> -> vector<16x128xf32>
    %16 = arith.addf %12, %15 : vector<16x128xf32>
    %c2 = arith.constant 2 : index
    %c0_11 = arith.constant 0 : index
    %c0_12 = arith.constant 0 : index
    %17 = vector.load %arg2[%c2, %c0_11, %c0_12] : memref<3x64x128xf32, #tpu.memory_space<vmem>>, vector<1x64x128xf32>
    %18 = vector.shape_cast %17 : vector<1x64x128xf32> to vector<64x128xf32>
    %cst_13 = arith.constant dense<0.000000e+00> : vector<16x128xf32>
    %19 = tpu.matmul %5, %18, %cst_13 {dimension_numbers = #tpu.dot_dimension_numbers<[1], [0], [0], [1], [0, 0, 1, 1], [], []>} : vector<16x64xf32>, vector<64x128xf32>, vector<16x128xf32> -> vector<16x128xf32>
    %20 = arith.addf %16, %19 : vector<16x128xf32>
    %c0_14 = arith.constant 0 : index
    %c0_15 = arith.constant 0 : index
    %c0_16 = arith.constant 0 : index
    %21 = vector.load %arg2[%c0_14, %c0_15, %c0_16] : memref<3x64x128xf32, #tpu.memory_space<vmem>>, vector<1x64x128xf32>
    %22 = vector.shape_cast %21 : vector<1x64x128xf32> to vector<64x128xf32>
    %cst_17 = arith.constant dense<0.000000e+00> : vector<16x128xf32>
    %23 = tpu.matmul %7, %22, %cst_17 {dimension_numbers = #tpu.dot_dimension_numbers<[1], [0], [0], [1], [0, 0, 1, 1], [], []>} : vector<16x64xf32>, vector<64x128xf32>, vector<16x128xf32> -> vector<16x128xf32>
    %c1_18 = arith.constant 1 : index
    %c0_19 = arith.constant 0 : index
    %c0_20 = arith.constant 0 : index
    %24 = vector.load %arg2[%c1_18, %c0_19, %c0_20] : memref<3x64x128xf32, #tpu.memory_space<vmem>>, vector<1x64x128xf32>
    %25 = vector.shape_cast %24 : vector<1x64x128xf32> to vector<64x128xf32>
    %cst_21 = arith.constant dense<0.000000e+00> : vector<16x128xf32>
    %26 = tpu.matmul %5, %25, %cst_21 {dimension_numbers = #tpu.dot_dimension_numbers<[1], [0], [0], [1], [0, 0, 1, 1], [], []>} : vector<16x64xf32>, vector<64x128xf32>, vector<16x128xf32> -> vector<16x128xf32>
    %27 = arith.addf %23, %26 : vector<16x128xf32>
    %c2_22 = arith.constant 2 : index
    %c0_23 = arith.constant 0 : index
    %c0_24 = arith.constant 0 : index
    %28 = vector.load %arg2[%c2_22, %c0_23, %c0_24] : memref<3x64x128xf32, #tpu.memory_space<vmem>>, vector<1x64x128xf32>
    %29 = vector.shape_cast %28 : vector<1x64x128xf32> to vector<64x128xf32>
    %cst_25 = arith.constant dense<0.000000e+00> : vector<16x128xf32>
    %30 = tpu.matmul %9, %29, %cst_25 {dimension_numbers = #tpu.dot_dimension_numbers<[1], [0], [0], [1], [0, 0, 1, 1], [], []>} : vector<16x64xf32>, vector<64x128xf32>, vector<16x128xf32> -> vector<16x128xf32>
    %31 = arith.addf %27, %30 : vector<16x128xf32>
    %c0_26 = arith.constant 0 : index
    %c0_27 = arith.constant 0 : index
    %32 = vector.load %arg4[%c0_26, %c0_27] : memref<1x128xf32, #tpu.memory_space<vmem>>, vector<1x128xf32>
    %33 = vector.broadcast %32 : vector<1x128xf32> to vector<16x128xf32>
    %34 = arith.addf %20, %33 : vector<16x128xf32>
    %cst_28 = arith.constant 0.000000e+00 : f32
    %35 = vector.broadcast %cst_28 : f32 to vector<16x128xf32>
    %36 = arith.maximumf %34, %35 : vector<16x128xf32>
    %c0_29 = arith.constant 0 : index
    %c0_30 = arith.constant 0 : index
    %37 = vector.load %arg4[%c0_29, %c0_30] : memref<1x128xf32, #tpu.memory_space<vmem>>, vector<1x128xf32>
    %38 = vector.broadcast %37 : vector<1x128xf32> to vector<16x128xf32>
    %39 = arith.addf %31, %38 : vector<16x128xf32>
    %cst_31 = arith.constant 0.000000e+00 : f32
    %40 = vector.broadcast %cst_31 : f32 to vector<16x128xf32>
    %41 = arith.maximumf %39, %40 : vector<16x128xf32>
    %cst_32 = arith.constant 0.000000e+00 : f32
    %42 = vector.broadcast %cst_32 : f32 to vector<2x1x128xf32>
    %43 = vector.shape_cast %41 : vector<16x128xf32> to vector<2x8x128xf32>
    %44 = tpu.concatenate %42, %43 in 1 : vector<2x1x128xf32>, vector<2x8x128xf32> -> vector<2x9x128xf32>
    %45 = vector.extract_strided_slice %44 {offsets = [0, 0, 0], sizes = [2, 8, 128], strides = [1, 1, 1]} : vector<2x9x128xf32> to vector<2x8x128xf32>
    %46 = vector.shape_cast %45 : vector<2x8x128xf32> to vector<16x128xf32>
    %47 = vector.extract_strided_slice %44 {offsets = [0, 1, 0], sizes = [2, 8, 128], strides = [1, 1, 1]} : vector<2x9x128xf32> to vector<2x8x128xf32>
    %48 = vector.shape_cast %47 : vector<2x8x128xf32> to vector<16x128xf32>
    %c0_33 = arith.constant 0 : index
    %c0_34 = arith.constant 0 : index
    %c0_35 = arith.constant 0 : index
    %49 = vector.load %arg3[%c0_33, %c0_34, %c0_35] : memref<3x128x128xf32, #tpu.memory_space<vmem>>, vector<1x128x128xf32>
    %50 = vector.shape_cast %49 : vector<1x128x128xf32> to vector<128x128xf32>
    %cst_36 = arith.constant dense<0.000000e+00> : vector<16x128xf32>
    %51 = tpu.matmul %46, %50, %cst_36 {dimension_numbers = #tpu.dot_dimension_numbers<[1], [0], [0], [1], [0, 0, 1, 1], [], []>} : vector<16x128xf32>, vector<128x128xf32>, vector<16x128xf32> -> vector<16x128xf32>
    %c1_37 = arith.constant 1 : index
    %c0_38 = arith.constant 0 : index
    %c0_39 = arith.constant 0 : index
    %52 = vector.load %arg3[%c1_37, %c0_38, %c0_39] : memref<3x128x128xf32, #tpu.memory_space<vmem>>, vector<1x128x128xf32>
    %53 = vector.shape_cast %52 : vector<1x128x128xf32> to vector<128x128xf32>
    %cst_40 = arith.constant dense<0.000000e+00> : vector<16x128xf32>
    %54 = tpu.matmul %36, %53, %cst_40 {dimension_numbers = #tpu.dot_dimension_numbers<[1], [0], [0], [1], [0, 0, 1, 1], [], []>} : vector<16x128xf32>, vector<128x128xf32>, vector<16x128xf32> -> vector<16x128xf32>
    %55 = arith.addf %51, %54 : vector<16x128xf32>
    %c2_41 = arith.constant 2 : index
    %c0_42 = arith.constant 0 : index
    %c0_43 = arith.constant 0 : index
    %56 = vector.load %arg3[%c2_41, %c0_42, %c0_43] : memref<3x128x128xf32, #tpu.memory_space<vmem>>, vector<1x128x128xf32>
    %57 = vector.shape_cast %56 : vector<1x128x128xf32> to vector<128x128xf32>
    %cst_44 = arith.constant dense<0.000000e+00> : vector<16x128xf32>
    %58 = tpu.matmul %48, %57, %cst_44 {dimension_numbers = #tpu.dot_dimension_numbers<[1], [0], [0], [1], [0, 0, 1, 1], [], []>} : vector<16x128xf32>, vector<128x128xf32>, vector<16x128xf32> -> vector<16x128xf32>
    %59 = arith.addf %55, %58 : vector<16x128xf32>
    %c0_45 = arith.constant 0 : index
    %c0_46 = arith.constant 0 : index
    %60 = vector.load %arg5[%c0_45, %c0_46] : memref<1x128xf32, #tpu.memory_space<vmem>>, vector<1x128xf32>
    %61 = vector.broadcast %60 : vector<1x128xf32> to vector<16x128xf32>
    %62 = arith.addf %59, %61 : vector<16x128xf32>
    %cst_47 = arith.constant 0.000000e+00 : f32
    %63 = vector.broadcast %cst_47 : f32 to vector<16x128xf32>
    %64 = arith.maximumf %62, %63 : vector<16x128xf32>
    %65 = vector.extract_strided_slice %64 {offsets = [0, 0], sizes = [1, 128], strides = [1, 1]} : vector<16x128xf32> to vector<1x128xf32>
    %66 = vector.extract_strided_slice %64 {offsets = [1, 0], sizes = [1, 128], strides = [1, 1]} : vector<16x128xf32> to vector<1x128xf32>
    %67 = vector.extract_strided_slice %64 {offsets = [2, 0], sizes = [1, 128], strides = [1, 1]} : vector<16x128xf32> to vector<1x128xf32>
    %68 = vector.extract_strided_slice %64 {offsets = [3, 0], sizes = [1, 128], strides = [1, 1]} : vector<16x128xf32> to vector<1x128xf32>
    %69 = vector.extract_strided_slice %64 {offsets = [4, 0], sizes = [1, 128], strides = [1, 1]} : vector<16x128xf32> to vector<1x128xf32>
    %70 = vector.extract_strided_slice %64 {offsets = [5, 0], sizes = [1, 128], strides = [1, 1]} : vector<16x128xf32> to vector<1x128xf32>
    %71 = vector.extract_strided_slice %64 {offsets = [6, 0], sizes = [1, 128], strides = [1, 1]} : vector<16x128xf32> to vector<1x128xf32>
    %72 = vector.extract_strided_slice %64 {offsets = [7, 0], sizes = [1, 128], strides = [1, 1]} : vector<16x128xf32> to vector<1x128xf32>
    %73 = tpu.concatenate %65, %66, %67, %68, %69, %70, %71, %72 in 1 : vector<1x128xf32>, vector<1x128xf32>, vector<1x128xf32>, vector<1x128xf32>, vector<1x128xf32>, vector<1x128xf32>, vector<1x128xf32>, vector<1x128xf32> -> vector<1x1024xf32>
    %74 = vector.extract_strided_slice %64 {offsets = [8, 0], sizes = [1, 128], strides = [1, 1]} : vector<16x128xf32> to vector<1x128xf32>
    %75 = vector.extract_strided_slice %64 {offsets = [9, 0], sizes = [1, 128], strides = [1, 1]} : vector<16x128xf32> to vector<1x128xf32>
    %76 = vector.extract_strided_slice %64 {offsets = [10, 0], sizes = [1, 128], strides = [1, 1]} : vector<16x128xf32> to vector<1x128xf32>
    %77 = vector.extract_strided_slice %64 {offsets = [11, 0], sizes = [1, 128], strides = [1, 1]} : vector<16x128xf32> to vector<1x128xf32>
    %78 = vector.extract_strided_slice %64 {offsets = [12, 0], sizes = [1, 128], strides = [1, 1]} : vector<16x128xf32> to vector<1x128xf32>
    %79 = vector.extract_strided_slice %64 {offsets = [13, 0], sizes = [1, 128], strides = [1, 1]} : vector<16x128xf32> to vector<1x128xf32>
    %80 = vector.extract_strided_slice %64 {offsets = [14, 0], sizes = [1, 128], strides = [1, 1]} : vector<16x128xf32> to vector<1x128xf32>
    %81 = vector.extract_strided_slice %64 {offsets = [15, 0], sizes = [1, 128], strides = [1, 1]} : vector<16x128xf32> to vector<1x128xf32>
    %82 = tpu.concatenate %74, %75, %76, %77, %78, %79, %80, %81 in 1 : vector<1x128xf32>, vector<1x128xf32>, vector<1x128xf32>, vector<1x128xf32>, vector<1x128xf32>, vector<1x128xf32>, vector<1x128xf32>, vector<1x128xf32> -> vector<1x1024xf32>
    %83 = tpu.concatenate %73, %82 in 0 : vector<1x1024xf32>, vector<1x1024xf32> -> vector<2x1024xf32>
    %c0_48 = arith.constant 0 : index
    %c0_49 = arith.constant 0 : index
    %84 = vector.load %arg6[%c0_48, %c0_49] : memref<1024x10xf32, #tpu.memory_space<vmem>>, vector<1024x10xf32>
    %cst_50 = arith.constant dense<0.000000e+00> : vector<2x10xf32>
    %85 = tpu.matmul %83, %84, %cst_50 {dimension_numbers = #tpu.dot_dimension_numbers<[1], [0], [0], [1], [0, 0, 1, 1], [], []>} : vector<2x1024xf32>, vector<1024x10xf32>, vector<2x10xf32> -> vector<2x10xf32>
    %c0_51 = arith.constant 0 : index
    %c0_52 = arith.constant 0 : index
    %86 = vector.load %arg7[%c0_51, %c0_52] : memref<1x10xf32, #tpu.memory_space<vmem>>, vector<1x10xf32>
    %87 = vector.broadcast %86 : vector<1x10xf32> to vector<2x10xf32>
    %88 = arith.addf %85, %87 : vector<2x10xf32>
    %c0_53 = arith.constant 0 : index
    %c0_54 = arith.constant 0 : index
    %89 = vector.load %arg8[%c0_53, %c0_54] : memref<2x10xf32, #tpu.memory_space<vmem>>, vector<2x10xf32>
    tpu.vector_store %arg8[%c0_53, %c0_54], %88 {strides = array<i32>} : memref<2x10xf32, #tpu.memory_space<vmem>>, vector<2x10xf32>,
    return
  }
}

</mosaic_0001>

<bundles_post_ra>
// kernel: tpu_custom_call.1
= control target key start
LH: loop header
LB: loop body
LE: loop exit
PB: predicated region body
PF: predicated region fallthrough
CT: control target
= control target key end

     0   :  { %vm76_vm0 = vcmask 523264   ;;  %s3037_s0 = inlined_call_operand.vmem [shape: f32[2,9,64], index: 0, kind: input, shape index: {}]   ;;  %s3038_s1 = inlined_call_operand.vmem [shape: f32[2,9,64], index: 1, kind: input, shape index: {}]   ;;  %s3039_s2 = inlined_call_operand.vmem [shape: f32[3,64,128], index: 2, kind: input, shape index: {}]   ;;  %s3040_s3 = inlined_call_operand.vmem [shape: f32[3,128,128], index: 3, kind: input, shape index: {}]   ;;  %s3041_s4 = inlined_call_operand.vmem [shape: f32[1,128], index: 4, kind: input, shape index: {}]   ;;  %s3042_s5 = inlined_call_operand.vmem [shape: f32[1,128], index: 5, kind: input, shape index: {}]   ;;  %s3043_s6 = inlined_call_operand.vmem [shape: f32[1024,10], index: 6, kind: input, shape index: {}]   ;;  %s3044_s7 = inlined_call_operand.vmem [shape: f32[1,10], index: 7, kind: input, shape index: {}]   ;;  %s3045_s8 = inlined_call_operand.hbm [shape: f32[2,10], index: 8, kind: output, shape index: {}]  }
   0x1   :  { %v1355_v0 = vld [vmem:[%s3039_s2 + $0x40] sm:$0xff]  ;;  %v1356_v1 = vld [vmem:[%s3039_s2 + $0x48] sm:$0xff]  ;;  %v1357_v5 = vld [vmem:[%s3039_s2 + $0x50] sm:$0xff] }
   0x2   :  { %v59_v2 = vld [vmem:[%s3039_s2] sm:$0xff]  ;;  %v1901_v3 = vpack.c.bf16 %v1356_v1, %v1355_v0  ;;  %v60_v4 = vld [vmem:[%s3039_s2 + $0x8] sm:$0xff]  ;;  %v1358_v6 = vld [vmem:[%s3039_s2 + $0x58] sm:$0xff] }
   0x3   :  { %v2322_v7 = vpack.c.bf16 %v60_v4, %v59_v2  ;;  %v2324_v8 = vpack.c.bf16 %v1358_v6, %v1357_v5  ;;  %v61_v9 = vld [vmem:[%s3039_s2 + $0x10] sm:$0xff]  ;;  %v62_v10 = vld [vmem:[%s3039_s2 + $0x18] sm:$0xff]  ;;  %v1359_v11 = vld [vmem:[%s3039_s2 + $0x60] sm:$0xff] }
   0x4   :  { %1902 = vmatprep.subr.bf16.mxu1 %v1901_v3  ;;  %v2335_v12 = vpack.c.bf16 %v62_v10, %v61_v9  ;;  %v1360_v13 = vld [vmem:[%s3039_s2 + $0x68] sm:$0xff]  ;;  %v63_v14 = vld [vmem:[%s3039_s2 + $0x20] sm:$0xff]  ;;  %v1361_v19 = vld [vmem:[%s3039_s2 + $0x70] sm:$0xff] }
   0x5   :  { %v64_v15 = vld [vmem:[%s3039_s2 + $0x28] sm:$0xff]  ;;  %1918 = vmatprep.subr.bf16.mxu0 %v2322_v7  ;;  %1904 = vmatpush3.bf16.msra.mxu1 %v1901_v3  ;;  %v1909_v16 = vpack.c.bf16 %v1360_v13, %v1359_v11  ;;  %v2352_v17 = vld [vmem:[%s3038_s1] sm:$0xff]  ;;  %v1362_v20 = vld [vmem:[%s3039_s2 + $0x78] sm:$0xff] }
   0x6   :  { %1920 = vmatpush3.bf16.msra.mxu0 %v2322_v7  ;;  %1906 = vmatprep.subr.bf16.mxu1 %v2324_v8  ;;  %v2355_v18 = vpack.c.bf16 %v64_v15, %v63_v14  ;;  %v30_v21 = vld [vmem:[%s3037_s0] sm:$0xff]  ;;  %v65_v22 = vld [vmem:[%s3039_s2 + $0x30] sm:$0xff]  ;;  %v66_v23 = vld [vmem:[%s3039_s2 + $0x38] sm:$0xff]  ;;  %v1913_v24 = vpack.c.bf16 %v1362_v20, %v1361_v19 }
   0x7   :  { %1922 = vmatprep.subr.bf16.mxu0 %v2335_v12  ;;  %1698 = vmatprep.mubr.msk.f32.mxu1 %vm76_vm0, %v2352_v17  ;;  %v2378_v25 = vpack.c.bf16 %v66_v23, %v65_v22  ;;  %v1367_v26 = vld [vmem:[%s3039_s2 + $0x80] sm:$0xff]  ;;  %v1368_v27 = vld [vmem:[%s3039_s2 + $0x88] sm:$0xff] }
   0x8   :  { %1717 = vmatprep.mubr.msk.f32.mxu0 %vm76_vm0, %v30_v21  ;;  %v31_v28 = vld [vmem:[%s3037_s0 + $0x8] sm:$0x1] }
   0x9   :  { %1908 = vmatpush3.bf16.msra.mxu1 %v2324_v8 }
   0xa   :  { %1924 = vmatpush3.bf16.msra.mxu0 %v2335_v12  ;;  %1910 = vmatprep.subr.bf16.mxu1 %v1909_v16 }
   0xb   :  { %1926 = vmatprep.subr.bf16.mxu0 %v2355_v18 }
   0xd   :  { %1912 = vmatpush3.bf16.msra.mxu1 %v1909_v16 }
   0xe   :  { %13 = vsyncpa [#allocation3], 0  ;;  %1928 = vmatpush3.bf16.msra.mxu0 %v2355_v18  ;;  %1914 = vmatprep.subr.bf16.mxu1 %v1913_v24  ;;  %v2391_v29 = vpack.c.bf16 %v1368_v27, %v1367_v26  ;;  %v43_v30 = vrot.slane %v30_v21, 1  ;;  %v1369_v31 = vld [vmem:[%s3039_s2 + $0x90] sm:$0xff]  ;;  %v1370_v32 = vld [vmem:[%s3039_s2 + $0x98] sm:$0xff]  ;;  %v44_v33 = vrot.slane %v31_v28, 1 }
   0xf   :  { %1930 = vmatprep.subr.bf16.mxu0 %v2378_v25  ;;  %v2402_v34 = vld [vmem:[%s3038_s1 + $0x10] sm:$0xff]  ;;  %vm42_vm1 = vcmask 1046528   ;;  %v1937_v36 = vpack.c.bf16 %v1370_v32, %v1369_v31  ;;  %v1371_v37 = vld [vmem:[%s3039_s2 + $0xa0] sm:$0xff]  ;;  %v1372_v38 = vld [vmem:[%s3039_s2 + $0xa8] sm:$0xff]  ;;  %v53_v55 = vrot.slane %v2352_v17, 1  ;;  %vm577_vm2 = vcmask 1040384  }
  0x10   :  { %v32_v35 = vld [vmem:[%s3037_s0 + $0x10] sm:$0xff]  ;;  %v45_v39 = vsel %vm42_vm1, %v43_v30, %v44_v33  ;;  %v1941_v40 = vpack.c.bf16 %v1372_v38, %v1371_v37  ;;  %v1374_v42 = vld [vmem:[%s3039_s2 + $0xb8] sm:$0xff]  ;;  %v1384_v45 = vld [vmem:[%s3040_s3 + $0x80] sm:$0xff]  ;;  %v56_v59 = vrot.slane %v2402_v34, 1  ;;  %vm1339_vm4 = vcmask 74752  }
  0x11   :  { %1916 = vmatpush3.bf16.msra.mxu1 %v1913_v24  ;;  %v1373_v41 = vld [vmem:[%s3039_s2 + $0xb0] sm:$0xff]  ;;  %v33_v43 = vld [vmem:[%s3037_s0 + $0x18] sm:$0x1]  ;;  %v1385_v46 = vld [vmem:[%s3040_s3 + $0x88] sm:$0xff]  ;;  %v46_v47 = vrot.slane %v32_v35, 1 }
  0x12   :  { %1932 = vmatpush3.bf16.msra.mxu0 %v2378_v25  ;;  %1950 = vmatprep.subr.bf16.mxu1 %v1901_v3  ;;  %v1945_v44 = vpack.c.bf16 %v1374_v42, %v1373_v41  ;;  %v47_v48 = vrot.slane %v33_v43, 1  ;;  %v1997_v49 = vpack.c.bf16 %v1385_v46, %v1384_v45  ;;  %v1386_v51 = vld [vmem:[%s3040_s3 + $0x90] sm:$0xff]  ;;  %v1387_v52 = vld [vmem:[%s3040_s3 + $0x98] sm:$0xff]  ;;  %v35_v54 = vld [vmem:[%s3038_s1 + $0x8] sm:$0x1] }
  0x13   :  { %1934 = vmatprep.subr.bf16.mxu0 %v2391_v29  ;;  %v2001_v53 = vpack.c.bf16 %v1387_v52, %v1386_v51  ;;  %v54_v56 = vrot.slane %v35_v54, 1  ;;  %v37_v58 = vld [vmem:[%s3038_s1 + $0x18] sm:$0x1]  ;;  %v1388_v62 = vld [vmem:[%s3040_s3 + $0xa0] sm:$0xff]  ;;  %v1389_v63 = vld [vmem:[%s3040_s3 + $0xa8] sm:$0xff] }
  0x14   :  { %1699 = vmatmul.mubr.msk.f32.vlgmr.msra.gmra.mrb[0].mxu1 %vm76_vm0, %v2402_v34  ;;  %v48_v50 = vsel %vm42_vm1, %v46_v47, %v47_v48  ;;  %v57_v60 = vrot.slane %v37_v58, 1  ;;  %v2005_v0 = vpack.c.bf16 %v1389_v63, %v1388_v62  ;;  %v1390_v1 = vld [vmem:[%s3040_s3 + $0xb0] sm:$0xff]  ;;  %v1391_v2 = vld [vmem:[%s3040_s3 + $0xb8] sm:$0xff]  ;;  %v1393_v5 = vld [vmem:[%s3040_s3 + $0xc8] sm:$0xff] }
  0x15   :  { %1718 = vmatmul.mubr.msk.f32.vlgmr.msra.gmra.mrb[0].mxu0 %vm76_vm0, %v32_v35  ;;  %1952 = vmatpush3.bf16.msra.mxu1 %v1901_v3  ;;  %v55_v57 = vsel %vm42_vm1, %v53_v55, %v54_v56  ;;  %v1392_v3 = vld [vmem:[%s3040_s3 + $0xc0] sm:$0xff]  ;;  %v2009_v4 = vpack.c.bf16 %v1391_v2, %v1390_v1  ;;  %v1397_v11 = vld [vmem:[%s3040_s3 + $0xe8] sm:$0xff]  ;;  %v1398_v13 = vld [vmem:[%s3040_s3 + $0xf0] sm:$0xff] }
  0x16   :  { %1936 = vmatpush3.bf16.msra.mxu0 %v2391_v29  ;;  %1954 = vmatprep.subr.bf16.mxu1 %v2324_v8  ;;  %v58_v61 = vsel %vm42_vm1, %v56_v59, %v57_v60  ;;  %v2013_v6 = vpack.c.bf16 %v1393_v5, %v1392_v3  ;;  %v1396_v10 = vld [vmem:[%s3040_s3 + $0xe0] sm:$0xff]  ;;  %v1399_v14 = vld [vmem:[%s3040_s3 + $0xf8] sm:$0xff]  ;;  %v941_v20 = vld [vmem:[%s3043_s6 + $0x88] sm:$0xff] }
  0x17   :  { %1938 = vmatprep.subr.bf16.mxu0 %v1937_v36  ;;  %1736 = vmatprep.mubr.msk.f32.mxu0 %vm76_vm0, %v45_v39  ;;  %v2025_v15 = vpack.c.bf16 %v1399_v14, %v1398_v13  ;;  %v940_v19 = vld [vmem:[%s3043_s6 + $0x80] sm:$0xff]  ;;  %v925_v23 = vld [vmem:[%s3043_s6 + $0x8] sm:$0xff]  ;;  %v943_v26 = vld [vmem:[%s3043_s6 + $0x98] sm:$0xff] }
  0x18   :  { %1755 = vmatprep.mubr.msk.f32.mxu1 %vm76_vm0, %v45_v39  ;;  %v924_v21 = vld [vmem:[%s3043_s6] sm:$0xff]  ;;  %v2093_v22 = vpack.c.bf16 %v941_v20, %v940_v19  ;;  %v926_v27 = vld [vmem:[%s3043_s6 + $0x10] sm:$0xff]  ;;  %v927_v28 = vld [vmem:[%s3043_s6 + $0x18] sm:$0xff] }
  0x19   :  { %1956 = vmatpush3.bf16.msra.mxu1 %v2324_v8  ;;  %v1395_v8 = vld [vmem:[%s3040_s3 + $0xd8] sm:$0xff]  ;;  %v2099_v30 = vpack.c.bf16 %v927_v28, %v926_v27  ;;  %v944_v31 = vld [vmem:[%s3043_s6 + $0xa0] sm:$0xff]  ;;  %v945_v32 = vld [vmem:[%s3043_s6 + $0xa8] sm:$0xff] }
  0x1a   :  { %1940 = vmatpush3.bf16.msra.mxu0 %v1937_v36  ;;  %1958 = vmatprep.subr.bf16.mxu1 %v1909_v16  ;;  %v2101_v33 = vpack.c.bf16 %v945_v32, %v944_v31  ;;  %v929_v35 = vld [vmem:[%s3043_s6 + $0x28] sm:$0xff]  ;;  %v946_v37 = vld [vmem:[%s3043_s6 + $0xb0] sm:$0xff]  ;;  %v947_v38 = vld [vmem:[%s3043_s6 + $0xb8] sm:$0xff] }
  0x1b   :  { %1942 = vmatprep.subr.bf16.mxu0 %v1941_v40  ;;  %v930_v39 = vld [vmem:[%s3043_s6 + $0x30] sm:$0xff]  ;;  %v931_v41 = vld [vmem:[%s3043_s6 + $0x38] sm:$0xff]  ;;  %v948_v43 = vld [vmem:[%s3043_s6 + $0xc0] sm:$0xff] }
  0x1c   :  { %v2107_v42 = vpack.c.bf16 %v931_v41, %v930_v39  ;;  %v932_v45 = vld [vmem:[%s3043_s6 + $0x40] sm:$0xff]  ;;  %v933_v47 = vld [vmem:[%s3043_s6 + $0x48] sm:$0xff]  ;;  %v934_v51 = vld [vmem:[%s3043_s6 + $0x50] sm:$0xff] }
  0x1d   :  { %1960 = vmatpush3.bf16.msra.mxu1 %v1909_v16  ;;  %v590_v16 = vld [vmem:[%s3040_s3] sm:$0xff]  ;;  %v2111_v48 = vpack.c.bf16 %v933_v47, %v932_v45  ;;  %v593_v1 = vld [vmem:[%s3040_s3 + $0x18] sm:$0xff]  ;;  %v600_v14 = vld [vmem:[%s3040_s3 + $0x50] sm:$0xff] }
  0x1e   :  { %1944 = vmatpush3.bf16.msra.mxu0 %v1941_v40  ;;  %1962 = vmatprep.subr.bf16.mxu1 %v1913_v24  ;;  %v1383_v58 = vld [vmem:[%s3041_s4] ss:$0 sm:$0xff]  ;;  %v604_v20 = vld [vmem:[%s3040_s3 + $0x70] sm:$0xff]  ;;  %v1405_v27 = vld [vmem:[%s3040_s3 + $0x108] sm:$0xff] }
  0x1f   :  { %1946 = vmatprep.subr.bf16.mxu0 %v1945_v44  ;;  %v594_v5 = vld [vmem:[%s3040_s3 + $0x20] sm:$0xff]  ;;  %vm1400_vm3 = vmneg %vm577_vm2  ;;  %v1406_v32 = vld [vmem:[%s3040_s3 + $0x110] sm:$0xff] }
  0x20   :  { %v1409_v41 = vld [vmem:[%s3040_s3 + $0x128] sm:$0xff]  ;;  %v1411_v45 = vld [vmem:[%s3040_s3 + $0x138] sm:$0xff]  ;;  %v1412_v47 = vld [vmem:[%s3040_s3 + $0x140] sm:$0xff] }
  0x21   :  { %1964 = vmatpush3.bf16.msra.mxu1 %v1913_v24  ;;  %v2095_v24 = vpack.c.bf16 %v925_v23, %v924_v21  ;;  %v605_v21 = vld [vmem:[%s3040_s3 + $0x78] sm:$0xff] }
  0x22   :  { %1948 = vmatpush3.bf16.msra.mxu0 %v1945_v44  ;;  %1966 = vmatprep.subr.bf16.mxu1 %v2322_v7  ;;  %v2057_v23 = vpack.c.bf16 %v605_v21, %v604_v20  ;;  %v1026_v20 = vld [vmem:[%s3043_s6 + $0x330] sm:$0xff]  ;;  %v1027_v21 = vld [vmem:[%s3043_s6 + $0x338] sm:$0xff] }
  0x23   :  { %1998 = vmatprep.subr.bf16.mxu0 %v1997_v49 }
  0x24   :  { %1756 = vmatmul.mubr.msk.f32.vlgmr.msra.gmra.mrb[2].mxu1 %vm76_vm0, %v48_v50 }
  0x25   :  { %1737 = vmatmul.mubr.msk.f32.vlgmr.msra.gmra.mrb[0].mxu0 %vm76_vm0, %v48_v50  ;;  %1968 = vmatpush3.bf16.msra.mxu1 %v2322_v7  ;;  %v1394_v7 = vld [vmem:[%s3040_s3 + $0xd0] sm:$0xff]  ;;  %v951_v50 = vld [vmem:[%s3043_s6 + $0xd8] sm:$0xff] }
  0x26   :  { %1970 = vmatprep.subr.bf16.mxu1 %v2335_v12  ;;  %1774 = vmatprep.mubr.msk.f32.mxu1 %vm76_vm0, %v2352_v17  ;;  %v2017_v9 = vpack.c.bf16 %v1395_v8, %v1394_v7  ;;  %v591_v17 = vld [vmem:[%s3040_s3 + $0x8] sm:$0xff]  ;;  %v596_v8 = vld [vmem:[%s3040_s3 + $0x30] sm:$0xff] }
  0x27   :  { %2000 = vmatpush3.bf16.msra.mxu0 %v1997_v49  ;;  %v950_v49 = vld [vmem:[%s3043_s6 + $0xd0] sm:$0xff] }
  0x28   :  { %2002 = vmatprep.subr.bf16.mxu0 %v2001_v53  ;;  %v2113_v52 = vpack.c.bf16 %v951_v50, %v950_v49  ;;  %v1414_v50 = vld [vmem:[%s3040_s3 + $0x150] sm:$0xff] }
  0x29   :  { %1972 = vmatpush3.bf16.msra.mxu1 %v2335_v12  ;;  %v2021_v12 = vpack.c.bf16 %v1397_v11, %v1396_v10  ;;  %v598_v11 = vld [vmem:[%s3040_s3 + $0x40] sm:$0xff] }
  0x2a   :  { %1974 = vmatprep.subr.bf16.mxu1 %v2355_v18 }
  0x2b   :  { %2004 = vmatpush3.bf16.msra.mxu0 %v2001_v53  ;;  %v935_v53 = vld [vmem:[%s3043_s6 + $0x58] sm:$0xff] }
  0x2c   :  { %2006 = vmatprep.subr.bf16.mxu0 %v2005_v0  ;;  %v2115_v54 = vpack.c.bf16 %v935_v53, %v934_v51  ;;  %v1415_v51 = vld [vmem:[%s3040_s3 + $0x158] sm:$0xff]  ;;  %v1416_v53 = vld [vmem:[%s3040_s3 + $0x160] sm:$0xff] }
  0x2d   :  { %1976 = vmatpush3.bf16.msra.mxu1 %v2355_v18  ;;  %v2516_v18 = vpack.c.bf16 %v591_v17, %v590_v16  ;;  %v602_v17 = vld [vmem:[%s3040_s3 + $0x60] sm:$0xff] }
  0x2e   :  { %1978 = vmatprep.subr.bf16.mxu1 %v2378_v25 }
  0x2f   :  { %2008 = vmatpush3.bf16.msra.mxu0 %v2005_v0  ;;  %v592_v0 = vld [vmem:[%s3040_s3 + $0x10] sm:$0xff] }
  0x30   :  { %2010 = vmatprep.subr.bf16.mxu0 %v2009_v4 }
  0x31   :  { %1980 = vmatpush3.bf16.msra.mxu1 %v2378_v25  ;;  %v942_v25 = vld [vmem:[%s3043_s6 + $0x90] sm:$0xff] }
  0x32   :  { %1982 = vmatprep.subr.bf16.mxu1 %v2391_v29 }
  0x33   :  { %2012 = vmatpush3.bf16.msra.mxu0 %v2009_v4  ;;  %v2033_v4 = vpack.c.bf16 %v593_v1, %v592_v0  ;;  %v1021_v0 = vld [vmem:[%s3043_s6 + $0x308] sm:$0xff] }
  0x34   :  { %1775 = vmatmul.mubr.msk.f32.vlgmr.msra.gmra.mrb[2].mxu1 %vm76_vm0, %v2402_v34  ;;  %2014 = vmatprep.subr.bf16.mxu0 %v2013_v6  ;;  %v928_v34 = vld [vmem:[%s3043_s6 + $0x20] sm:$0xff] }
  0x35   :  { %1984 = vmatpush3.bf16.msra.mxu1 %v2391_v29  ;;  %1793 = vmatprep.mubr.msk.f32.mxu1 %vm76_vm0, %v55_v57  ;;  %v2097_v29 = vpack.c.bf16 %v943_v26, %v942_v25  ;;  %v1404_v26 = vld [vmem:[%s3040_s3 + $0x100] sm:$0xff] }
  0x36   :  { %1986 = vmatprep.subr.bf16.mxu1 %v1937_v36  ;;  %v2061_v31 = vpack.c.bf16 %v1405_v27, %v1404_v26  ;;  %v1028_v26 = vld [vmem:[%s3043_s6 + $0x340] sm:$0xff]  ;;  %v1029_v27 = vld [vmem:[%s3043_s6 + $0x348] sm:$0xff] }
  0x37   :  { %2016 = vmatpush3.bf16.msra.mxu0 %v2013_v6  ;;  %v595_v6 = vld [vmem:[%s3040_s3 + $0x28] sm:$0xff] }
  0x38   :  { %2018 = vmatprep.subr.bf16.mxu0 %v2017_v9  ;;  %v2037_v7 = vpack.c.bf16 %v595_v6, %v594_v5 }
  0x39   :  { %1988 = vmatpush3.bf16.msra.mxu1 %v1937_v36  ;;  %v2103_v36 = vpack.c.bf16 %v929_v35, %v928_v34 }
  0x3a   :  { %1990 = vmatprep.subr.bf16.mxu1 %v1941_v40 }
  0x3b   :  { %2020 = vmatpush3.bf16.msra.mxu0 %v2017_v9  ;;  %v597_v9 = vld [vmem:[%s3040_s3 + $0x38] sm:$0xff] }
  0x3c   :  { %2022 = vmatprep.subr.bf16.mxu0 %v2021_v12  ;;  %v2041_v10 = vpack.c.bf16 %v597_v9, %v596_v8  ;;  %v1023_v8 = vld [vmem:[%s3043_s6 + $0x318] sm:$0xff] }
  0x3d   :  { %1992 = vmatpush3.bf16.msra.mxu1 %v1941_v40  ;;  %v2105_v40 = vpack.c.bf16 %v947_v38, %v946_v37 }
  0x3e   :  { %1994 = vmatprep.subr.bf16.mxu1 %v1945_v44 }
  0x3f   :  { %2024 = vmatpush3.bf16.msra.mxu0 %v2021_v12  ;;  %v599_v12 = vld [vmem:[%s3040_s3 + $0x48] sm:$0xff] }
  0x40   :  { %2026 = vmatprep.subr.bf16.mxu0 %v2025_v15  ;;  %v2045_v13 = vpack.c.bf16 %v599_v12, %v598_v11  ;;  %v1041_v11 = vld [vmem:[%s3043_s6 + $0x3a8] sm:$0xff] }
  0x41   :  { %1996 = vmatpush3.bf16.msra.mxu1 %v1945_v44  ;;  %v949_v44 = vld [vmem:[%s3043_s6 + $0xc8] sm:$0xff] }
  0x42   :  { %2094 = vmatprep.subr.bf16.mxu1 %v2093_v22  ;;  %v2109_v46 = vpack.c.bf16 %v949_v44, %v948_v43  ;;  %v1410_v44 = vld [vmem:[%s3040_s3 + $0x130] sm:$0xff] }
  0x43   :  { %2028 = vmatpush3.bf16.msra.mxu0 %v2025_v15  ;;  %v601_v15 = vld [vmem:[%s3040_s3 + $0x58] sm:$0xff] }
  0x44   :  { %1794 = vmatmul.mubr.msk.f32.vlgmr.msra.gmra.mrb[2].mxu1 %vm76_vm0, %v58_v61  ;;  %2030 = vmatprep.subr.bf16.mxu0 %v2516_v18  ;;  %v2049_v16 = vpack.c.bf16 %v601_v15, %v600_v14  ;;  %v1024_v14 = vld [vmem:[%s3043_s6 + $0x320] sm:$0xff]  ;;  %v1025_v15 = vld [vmem:[%s3043_s6 + $0x328] sm:$0xff] }
  0x45   :  { %2096 = vmatpush3.bf16.msra.mxu1 %v2095_v24 }
  0x46   :  { %2098 = vmatprep.subr.bf16.mxu1 %v2097_v29 }
  0x49   :  { %2100 = vmatpush3.bf16.msra.mxu1 %v2099_v30 }
  0x4a   :  { %2102 = vmatprep.subr.bf16.mxu1 %v2101_v33  ;;  %v1407_v33 = vld [vmem:[%s3040_s3 + $0x118] sm:$0xff] }
  0x4b   :  { %v2065_v38 = vpack.c.bf16 %v1407_v33, %v1406_v32  ;;  %v1030_v32 = vld [vmem:[%s3043_s6 + $0x350] sm:$0xff]  ;;  %v1031_v33 = vld [vmem:[%s3043_s6 + $0x358] sm:$0xff] }
  0x4d   :  { %2104 = vmatpush3.bf16.msra.mxu1 %v2103_v36 }
  0x4e   :  { %2106 = vmatprep.subr.bf16.mxu1 %v2105_v40  ;;  %v1408_v40 = vld [vmem:[%s3040_s3 + $0x120] sm:$0xff] }
  0x4f   :  { %v2069_v43 = vpack.c.bf16 %v1409_v41, %v1408_v40  ;;  %v1048_v41 = vld [vmem:[%s3043_s6 + $0x3e0] sm:$0xff] }
  0x51   :  { %2108 = vmatpush3.bf16.msra.mxu1 %v2107_v42 }
  0x52   :  { %2110 = vmatprep.subr.bf16.mxu1 %v2109_v46  ;;  %v2073_v46 = vpack.c.bf16 %v1411_v45, %v1410_v44  ;;  %v1032_v44 = vld [vmem:[%s3043_s6 + $0x360] sm:$0xff]  ;;  %v1033_v45 = vld [vmem:[%s3043_s6 + $0x368] sm:$0xff] }
  0x55   :  { %2112 = vmatpush3.bf16.msra.mxu1 %v2111_v48  ;;  %v1413_v48 = vld [vmem:[%s3040_s3 + $0x148] sm:$0xff] }
  0x56   :  { %2114 = vmatprep.subr.bf16.mxu1 %v2113_v52  ;;  %v2077_v49 = vpack.c.bf16 %v1413_v48, %v1412_v47  ;;  %v2081_v52 = vpack.c.bf16 %v1415_v51, %v1414_v50  ;;  %v954_v47 = vld [vmem:[%s3043_s6 + $0xf0] sm:$0xff]  ;;  %v955_v48 = vld [vmem:[%s3043_s6 + $0xf8] sm:$0xff] }
  0x57   :  { %v938_v50 = vld [vmem:[%s3043_s6 + $0x70] sm:$0xff]  ;;  %v939_v51 = vld [vmem:[%s3043_s6 + $0x78] sm:$0xff] }
  0x59   :  { %2116 = vmatpush3.bf16.msra.mxu1 %v2115_v54  ;;  %v1417_v54 = vld [vmem:[%s3040_s3 + $0x168] sm:$0xff] }
  0xe7   :  { %v1700_v55 = vpop.f32.mrb[0].mxu1 }
  0xe8   :  { %v147_v56 = vpop.f32.mrb[1].mxu1 }
  0xf8   :  { %v1738_v57 = vpop.f32.mrb[0].mxu0 }
  0xf9   :  { %v2221_v59 = vadd.f32 %v1738_v57, %v1700_v55  ;;  %v314_v60 = vpop.f32.mrb[1].mxu0  ;;  %v2085_v55 = vpack.c.bf16 %v1417_v54, %v1416_v53  ;;  %v1419_v57 = vld [vmem:[%s3040_s3 + $0x178] sm:$0xff]  ;;  %v1050_v53 = vld [vmem:[%s3043_s6 + $0x3f0] sm:$0xff] }
  0xfa   :  { %v2222_v61 = vadd.f32 %v314_v60, %v147_v56  ;;  %v1418_v56 = vld [vmem:[%s3040_s3 + $0x170] sm:$0xff]  ;;  %v1037_v60 = vld [vmem:[%s3043_s6 + $0x388] sm:$0xff]  ;;  %v1051_v54 = vld [vmem:[%s3043_s6 + $0x3f8] sm:$0xff] }
  0xfb   :  { %v564_v62 = vadd.f32 %v2221_v59, %v1383_v58  ;;  %v1036_v59 = vld [vmem:[%s3043_s6 + $0x380] sm:$0xff] }
  0xfc   :  { %v563_v63 = vadd.f32 %v2222_v61, %v1383_v58 }
  0xfd   :  { %v566_v3 = vmax.f32 %v564_v62, 0.0  ;;  %v2189_v62 = vpack.c.bf16 %v1037_v60, %v1036_v59  ;;  %v972_v59 = vld [vmem:[%s3043_s6 + $0x180] sm:$0xff]  ;;  %v973_v60 = vld [vmem:[%s3043_s6 + $0x188] sm:$0xff] }
  0xfe   :  { %v565_v2 = vmax.f32 %v563_v63, 0.0  ;;  %v1020_v63 = vld [vmem:[%s3043_s6 + $0x300] sm:$0xff] }
  0xff   :  { %v2191_v5 = vpack.c.bf16 %v1021_v0, %v1020_v63  ;;  %v956_v0 = vld [vmem:[%s3043_s6 + $0x100] sm:$0xff] }
 0x100   :  { %1828 = vmatprep.mubr.f32.mxu0 %v565_v2 }
 0x101   :  { %1829 = vmatmul.mubr.f32.vlgmr.msra.gmra.mrb[2].mxu0 %v566_v3  ;;  %v1038_v3 = vld [vmem:[%s3043_s6 + $0x390] sm:$0xff] }
 0x102   :  { %2032 = vmatpush3.bf16.msra.mxu0 %v2516_v18  ;;  %v603_v18 = vld [vmem:[%s3040_s3 + $0x68] sm:$0xff] }
 0x103   :  { %2034 = vmatprep.subr.bf16.mxu0 %v2033_v4  ;;  %v2053_v19 = vpack.c.bf16 %v603_v18, %v602_v17  ;;  %v1043_v17 = vld [vmem:[%s3043_s6 + $0x3b8] sm:$0xff]  ;;  %v2199_v18 = vpack.c.bf16 %v1025_v15, %v1024_v14 }
 0x106   :  { %2036 = vmatpush3.bf16.msra.mxu0 %v2033_v4  ;;  %v1039_v4 = vld [vmem:[%s3043_s6 + $0x398] sm:$0xff] }
 0x107   :  { %2038 = vmatprep.subr.bf16.mxu0 %v2037_v7  ;;  %v2193_v6 = vpack.c.bf16 %v1039_v4, %v1038_v3  ;;  %v957_v3 = vld [vmem:[%s3043_s6 + $0x108] sm:$0xff]  ;;  %v974_v4 = vld [vmem:[%s3043_s6 + $0x190] sm:$0xff] }
 0x10a   :  { %2040 = vmatpush3.bf16.msra.mxu0 %v2037_v7  ;;  %v1022_v7 = vld [vmem:[%s3043_s6 + $0x310] sm:$0xff] }
 0x10b   :  { %2042 = vmatprep.subr.bf16.mxu0 %v2041_v10  ;;  %v2195_v12 = vpack.c.bf16 %v1023_v8, %v1022_v7 }
 0x10e   :  { %2044 = vmatpush3.bf16.msra.mxu0 %v2041_v10  ;;  %v1040_v10 = vld [vmem:[%s3043_s6 + $0x3a0] sm:$0xff] }
 0x10f   :  { %2046 = vmatprep.subr.bf16.mxu0 %v2045_v13 }
 0x112   :  { %2048 = vmatpush3.bf16.msra.mxu0 %v2045_v13  ;;  %v2197_v13 = vpack.c.bf16 %v1041_v11, %v1040_v10 }
 0x113   :  { %2050 = vmatprep.subr.bf16.mxu0 %v2049_v16 }
 0x116   :  { %2052 = vmatpush3.bf16.msra.mxu0 %v2049_v16  ;;  %v1042_v16 = vld [vmem:[%s3043_s6 + $0x3b0] sm:$0xff] }
 0x117   :  { %v1795_v22 = vpop.f32.mrb[2].mxu1  ;;  %2054 = vmatprep.subr.bf16.mxu0 %v2053_v19 }
 0x118   :  { %v568_v24 = vadd.f32 %v1795_v22, %v1383_v58  ;;  %v545_v25 = vpop.f32.mrb[3].mxu1  ;;  %v1044_v22 = vld [vmem:[%s3043_s6 + $0x3c0] sm:$0xff] }
 0x119   :  { %v567_v28 = vadd.f32 %v1383_v58, %v545_v25  ;;  %v2089_v58 = vpack.c.bf16 %v1419_v57, %v1418_v56  ;;  %v2217_v56 = vpack.c.bf16 %v1051_v54, %v1050_v53  ;;  %v1035_v57 = vld [vmem:[%s3043_s6 + $0x378] sm:$0xff]  ;;  %v982_v53 = vld [vmem:[%s3043_s6 + $0x1d0] sm:$0xff] }
 0x11a   :  { %2056 = vmatpush3.bf16.msra.mxu0 %v2053_v19  ;;  %v570_v29 = vmax.f32 %v568_v24, 0.0  ;;  %v2201_v19 = vpack.c.bf16 %v1043_v17, %v1042_v16  ;;  %v2203_v24 = vpack.c.bf16 %v1027_v21, %v1026_v20  ;;  %v983_v54 = vld [vmem:[%s3043_s6 + $0x1d8] sm:$0xff] }
 0x11b   :  { %v569_v30 = vmax.f32 %v567_v28, 0.0  ;;  %2058 = vmatprep.subr.bf16.mxu0 %v2057_v23  ;;  %v1046_v28 = vld [vmem:[%s3043_s6 + $0x3d0] sm:$0xff] }
 0x11c   :  { %v574_v35 = vrot.slane %v570_v29, 7  ;;  %v1047_v29 = vld [vmem:[%s3043_s6 + $0x3d8] sm:$0xff] }
 0x11d   :  { %v573_v34 = vrot.slane %v569_v30, 7  ;;  %v2207_v30 = vpack.c.bf16 %v1029_v27, %v1028_v26  ;;  %v958_v26 = vld [vmem:[%s3043_s6 + $0x110] sm:$0xff]  ;;  %v959_v27 = vld [vmem:[%s3043_s6 + $0x118] sm:$0xff] }
 0x11e   :  { %2060 = vmatpush3.bf16.msra.mxu0 %v2057_v23  ;;  %v579_v61 = vsel %vm577_vm2, 0.0, %v574_v35  ;;  %v586_v2 = vrot.slane %v574_v35, 1  ;;  %v1045_v23 = vld [vmem:[%s3043_s6 + $0x3c8] sm:$0xff] }
 0x11f   :  { %v578_v36 = vsel %vm577_vm2, 0.0, %v573_v34  ;;  %v583_v37 = vrot.slane %v573_v34, 1  ;;  %1863 = vmatprep.mubr.msk.f32.mxu0 %vm1400_vm3, %v573_v34  ;;  %2062 = vmatprep.subr.bf16.mxu0 %v2061_v31  ;;  %v585_v1 = vrot.slane %v579_v61, 1  ;;  %v2205_v25 = vpack.c.bf16 %v1045_v23, %v1044_v22 }
 0x120   :  { %v582_v39 = vrot.slane %v578_v36, 1  ;;  %v2211_v34 = vpack.c.bf16 %v1031_v33, %v1030_v32  ;;  %v953_v36 = vld [vmem:[%s3043_s6 + $0xe8] sm:$0xff]  ;;  %v2125_v61 = vpack.c.bf16 %v973_v60, %v972_v59  ;;  %v984_v59 = vld [vmem:[%s3043_s6 + $0x1e0] sm:$0xff] }
 0x121   :  { %1864 = vmatmul.mubr.msk.f32.vlgmr.msra.gmra.mrb[2].mxu0 %vm1400_vm3, %v574_v35  ;;  %v587_v9 = vsel %vm42_vm1, %v585_v1, %v586_v2  ;;  %v952_v35 = vld [vmem:[%s3043_s6 + $0xe0] sm:$0xff]  ;;  %v985_v60 = vld [vmem:[%s3043_s6 + $0x1e8] sm:$0xff] }
 0x122   :  { %2064 = vmatpush3.bf16.msra.mxu0 %v2061_v31  ;;  %v584_v42 = vsel %vm42_vm1, %v582_v39, %v583_v37  ;;  %v2209_v31 = vpack.c.bf16 %v1047_v29, %v1046_v28  ;;  %v2117_v37 = vpack.c.bf16 %v953_v36, %v952_v35  ;;  %v937_v39 = vld [vmem:[%s3043_s6 + $0x68] sm:$0xff]  ;;  %v2131_v36 = vpack.c.bf16 %v959_v27, %v958_v26  ;;  %v1011_v26 = vld [vmem:[%s3043_s6 + $0x2b8] sm:$0xff] }
 0x123   :  { %2066 = vmatprep.subr.bf16.mxu0 %v2065_v38  ;;  %1898 = vmatprep.mubr.f32.mxu0 %v584_v42  ;;  %v1049_v42 = vld [vmem:[%s3043_s6 + $0x3e8] sm:$0xff] }
 0x124   :  { %2118 = vmatprep.subr.bf16.mxu1 %v2117_v37 }
 0x126   :  { %2068 = vmatpush3.bf16.msra.mxu0 %v2065_v38  ;;  %v936_v38 = vld [vmem:[%s3043_s6 + $0x60] sm:$0xff] }
 0x127   :  { %2070 = vmatprep.subr.bf16.mxu0 %v2069_v43  ;;  %v2119_v40 = vpack.c.bf16 %v937_v39, %v936_v38  ;;  %v960_v39 = vld [vmem:[%s3043_s6 + $0x120] sm:$0xff] }
 0x129   :  { %2120 = vmatpush3.bf16.msra.mxu1 %v2119_v40  ;;  %v961_v40 = vld [vmem:[%s3043_s6 + $0x128] sm:$0xff] }
 0x12a   :  { %2072 = vmatpush3.bf16.msra.mxu0 %v2069_v43  ;;  %v2213_v43 = vpack.c.bf16 %v1049_v42, %v1048_v41  ;;  %v978_v41 = vld [vmem:[%s3043_s6 + $0x1b0] sm:$0xff]  ;;  %v979_v42 = vld [vmem:[%s3043_s6 + $0x1b8] sm:$0xff] }
 0x12b   :  { %2074 = vmatprep.subr.bf16.mxu0 %v2073_v46 }
 0x12e   :  { %2076 = vmatpush3.bf16.msra.mxu0 %v2073_v46  ;;  %v2215_v46 = vpack.c.bf16 %v1033_v45, %v1032_v44  ;;  %v2137_v44 = vpack.c.bf16 %v979_v42, %v978_v41  ;;  %v962_v45 = vld [vmem:[%s3043_s6 + $0x130] sm:$0xff] }
 0x12f   :  { %2078 = vmatprep.subr.bf16.mxu0 %v2077_v49  ;;  %v998_v42 = vld [vmem:[%s3043_s6 + $0x250] sm:$0xff] }
 0x132   :  { %2080 = vmatpush3.bf16.msra.mxu0 %v2077_v49  ;;  %v2121_v49 = vpack.c.bf16 %v955_v48, %v954_v47  ;;  %v980_v47 = vld [vmem:[%s3043_s6 + $0x1c0] sm:$0xff]  ;;  %v981_v48 = vld [vmem:[%s3043_s6 + $0x1c8] sm:$0xff] }
 0x133   :  { %2082 = vmatprep.subr.bf16.mxu0 %v2081_v52 }
 0x134   :  { %2122 = vmatprep.subr.bf16.mxu1 %v2121_v49 }
 0x136   :  { %2084 = vmatpush3.bf16.msra.mxu0 %v2081_v52  ;;  %v2123_v52 = vpack.c.bf16 %v939_v51, %v938_v50  ;;  %v2141_v50 = vpack.c.bf16 %v981_v48, %v980_v47  ;;  %v964_v51 = vld [vmem:[%s3043_s6 + $0x140] sm:$0xff] }
 0x137   :  { %2086 = vmatprep.subr.bf16.mxu0 %v2085_v55  ;;  %v1000_v48 = vld [vmem:[%s3043_s6 + $0x260] sm:$0xff] }
 0x138   :  { %2124 = vmatpush3.bf16.msra.mxu1 %v2123_v52  ;;  %v965_v52 = vld [vmem:[%s3043_s6 + $0x148] sm:$0xff] }
 0x139   :  { %2126 = vmatprep.subr.bf16.mxu1 %v2125_v61 }
 0x13a   :  { %2088 = vmatpush3.bf16.msra.mxu0 %v2085_v55  ;;  %v1034_v55 = vld [vmem:[%s3043_s6 + $0x370] sm:$0xff] }
 0x13b   :  { %2090 = vmatprep.subr.bf16.mxu0 %v2089_v58 }
 0x13e   :  { %2092 = vmatpush3.bf16.msra.mxu0 %v2089_v58  ;;  %v2219_v58 = vpack.c.bf16 %v1035_v57, %v1034_v55  ;;  %v2143_v55 = vpack.c.bf16 %v965_v52, %v964_v51  ;;  %v966_v57 = vld [vmem:[%s3043_s6 + $0x150] sm:$0xff]  ;;  %v1019_v51 = vld [vmem:[%s3043_s6 + $0x2f8] sm:$0xff] }
 0x13f   :  { %2190 = vmatprep.subr.bf16.mxu0 %v2189_v62  ;;  %v1420_v62 = vld [vmem:[%s3042_s5] ss:$0 sm:$0xff] }
 0x141   :  { %1899 = vmatmul.mubr.f32.vlgmr.msra.gmra.mrb[2].mxu0 %v587_v9  ;;  %v2127_v9 = vpack.c.bf16 %v957_v3, %v956_v0  ;;  %v969_v0 = vld [vmem:[%s3043_s6 + $0x168] sm:$0xff] }
 0x142   :  { %2192 = vmatpush3.bf16.msra.mxu0 %v2191_v5  ;;  %v975_v5 = vld [vmem:[%s3043_s6 + $0x198] sm:$0xff] }
 0x143   :  { %2194 = vmatprep.subr.bf16.mxu0 %v2193_v6  ;;  %v2129_v10 = vpack.c.bf16 %v975_v5, %v974_v4  ;;  %v970_v5 = vld [vmem:[%s3043_s6 + $0x170] sm:$0xff] }
 0x146   :  { %2196 = vmatpush3.bf16.msra.mxu0 %v2195_v12 }
 0x147   :  { %2198 = vmatprep.subr.bf16.mxu0 %v2197_v13 }
 0x14a   :  { %2200 = vmatpush3.bf16.msra.mxu0 %v2199_v18 }
 0x14b   :  { %2202 = vmatprep.subr.bf16.mxu0 %v2201_v19 }
 0x14e   :  { %2204 = vmatpush3.bf16.msra.mxu0 %v2203_v24 }
 0x14f   :  { %2206 = vmatprep.subr.bf16.mxu0 %v2205_v25 }
 0x152   :  { %2208 = vmatpush3.bf16.msra.mxu0 %v2207_v30  ;;  %v976_v30 = vld [vmem:[%s3043_s6 + $0x1a0] sm:$0xff] }
 0x153   :  { %2210 = vmatprep.subr.bf16.mxu0 %v2209_v31  ;;  %v977_v31 = vld [vmem:[%s3043_s6 + $0x1a8] sm:$0xff] }
 0x154   :  { %v2133_v38 = vpack.c.bf16 %v977_v31, %v976_v30  ;;  %v995_v30 = vld [vmem:[%s3043_s6 + $0x238] sm:$0xff]  ;;  %v1012_v31 = vld [vmem:[%s3043_s6 + $0x2c0] sm:$0xff] }
 0x156   :  { %2212 = vmatpush3.bf16.msra.mxu0 %v2211_v34 }
 0x157   :  { %2214 = vmatprep.subr.bf16.mxu0 %v2213_v43  ;;  %v2135_v43 = vpack.c.bf16 %v961_v40, %v960_v39  ;;  %v1015_v39 = vld [vmem:[%s3043_s6 + $0x2d8] sm:$0xff] }
 0x15a   :  { %2216 = vmatpush3.bf16.msra.mxu0 %v2215_v46  ;;  %v963_v46 = vld [vmem:[%s3043_s6 + $0x138] sm:$0xff] }
 0x15b   :  { %2218 = vmatprep.subr.bf16.mxu0 %v2217_v56  ;;  %v2139_v49 = vpack.c.bf16 %v963_v46, %v962_v45  ;;  %v2145_v56 = vpack.c.bf16 %v983_v54, %v982_v53  ;;  %v1017_v45 = vld [vmem:[%s3043_s6 + $0x2e8] sm:$0xff]  ;;  %v1002_v54 = vld [vmem:[%s3043_s6 + $0x270] sm:$0xff] }
 0x15e   :  { %2220 = vmatpush3.bf16.msra.mxu0 %v2219_v58  ;;  %v967_v58 = vld [vmem:[%s3043_s6 + $0x158] sm:$0xff] }
 0x15f   :  { %v2147_v61 = vpack.c.bf16 %v967_v58, %v966_v57 }
 0x214   :  { %v1900_v63 = vpop.f32.mrb[2].mxu0 }
 0x215   :  { %v875_v1 = vadd.f32 %v1900_v63, %v1420_v62  ;;  %v856_v2 = vpop.f32.mrb[3].mxu0  ;;  %v968_v63 = vld [vmem:[%s3043_s6 + $0x160] sm:$0xff] }
 0x216   :  { %v874_v6 = vadd.f32 %v1420_v62, %v856_v2  ;;  %v2149_v62 = vpack.c.bf16 %v985_v60, %v984_v59  ;;  %v987_v2 = vld [vmem:[%s3043_s6 + $0x1f8] sm:$0xff]  ;;  %v2151_v3 = vpack.c.bf16 %v969_v0, %v968_v63  ;;  %v1427_v63 = vld [vmem:[%s3044_s7] ss:$0 sm:$0xff] }
 0x217   :  { %v877_v7 = vmax.f32 %v875_v1, 0.0  ;;  %v986_v1 = vld [vmem:[%s3043_s6 + $0x1f0] sm:$0xff] }
 0x218   :  { %v876_v8 = vmax.f32 %v874_v6, 0.0  ;;  %v2153_v4 = vpack.c.bf16 %v987_v2, %v986_v1  ;;  %v971_v6 = vld [vmem:[%s3043_s6 + $0x178] sm:$0xff] }
 0x219   :  { %v900_v11 = vrot.slane %v877_v7, 7  ;;  %v1423_v12 = vrot.slane %v877_v7, 10  ;;  %v1426_v13 = vrot.slane %v877_v7, 13  ;;  %v1422_v14 = vrot.slane %v877_v7, 9 }
 0x21a   :  { %v879_v15 = vrot.slane %v876_v8, 1  ;;  %v891_v16 = vrot.slane %v876_v8, 7  ;;  %v883_v17 = vrot.slane %v876_v8, 3  ;;  %v889_v18 = vrot.slane %v876_v8, 6 }
 0x21b   :  { %v916_v19 = vsel %vm577_vm2, %v876_v8, %v900_v11  ;;  %v907_v20 = vrot.slane %v900_v11, 7  ;;  %v881_v21 = vrot.slane %v876_v8, 2  ;;  %v887_v22 = vrot.slane %v876_v8, 5  ;;  %v988_v11 = vld [vmem:[%s3043_s6 + $0x200] sm:$0xff] }
 0x21c   :  { %v917_v23 = vsel %vm577_vm2, %v879_v15, %v877_v7  ;;  %v919_v24 = vsel %vm577_vm2, %v883_v17, %v1423_v12  ;;  %v922_v25 = vsel %vm577_vm2, %v889_v18, %v1426_v13  ;;  %v1425_v28 = vrot.slane %v877_v7, 12  ;;  %v989_v12 = vld [vmem:[%s3043_s6 + $0x208] sm:$0xff]  ;;  %v1006_v13 = vld [vmem:[%s3043_s6 + $0x290] sm:$0xff]  ;;  %v991_v18 = vld [vmem:[%s3043_s6 + $0x218] sm:$0xff] }
 0x21d   :  { %1123 = vmatprep.mubr.f32.mxu1 %v917_v23  ;;  %v923_v29 = vsel %vm577_vm2, %v891_v16, %v907_v20  ;;  %v2849_v32 = vsel %vm577_vm2, %v881_v21, %v1422_v14  ;;  %v885_v33 = vrot.slane %v876_v8, 4  ;;  %v1424_v34 = vrot.slane %v877_v7, 11  ;;  %v1004_v7 = vld [vmem:[%s3043_s6 + $0x280] sm:$0xff]  ;;  %v1005_v8 = vld [vmem:[%s3043_s6 + $0x288] sm:$0xff]  ;;  %v1007_v14 = vld [vmem:[%s3043_s6 + $0x298] sm:$0xff] }
 0x21e   :  { %1124 = vmatmul.mubr.f32.vlgmr.msra.gmra.mrb[4].mxu1 %v916_v19  ;;  %1333 = vmatprep.mubr.f32.mxu0 %v923_v29  ;;  %v2852_v35 = vsel %vm577_vm2, %v887_v22, %v1425_v28  ;;  %v2159_v15 = vpack.c.bf16 %v989_v12, %v988_v11  ;;  %v2161_v16 = vpack.c.bf16 %v1007_v14, %v1006_v13  ;;  %v990_v17 = vld [vmem:[%s3043_s6 + $0x210] sm:$0xff]  ;;  %v1008_v19 = vld [vmem:[%s3043_s6 + $0x2a0] sm:$0xff]  ;;  %v1009_v20 = vld [vmem:[%s3043_s6 + $0x2a8] sm:$0xff] }
 0x21f   :  { %2128 = vmatpush3.bf16.msra.mxu1 %v2127_v9  ;;  %1193 = vmatprep.mubr.f32.mxu1 %v919_v24  ;;  %v2855_v37 = vsel %vm577_vm2, %v885_v33, %v1424_v34  ;;  %v2155_v9 = vpack.c.bf16 %v971_v6, %v970_v5  ;;  %v2163_v21 = vpack.c.bf16 %v991_v18, %v990_v17  ;;  %v992_v23 = vld [vmem:[%s3043_s6 + $0x220] sm:$0xff]  ;;  %v993_v24 = vld [vmem:[%s3043_s6 + $0x228] sm:$0xff]  ;;  %v994_v29 = vld [vmem:[%s3043_s6 + $0x230] sm:$0xff] }
 0x220   :  { %1334 = vmatmul.mubr.f32.vlgmr.msra.gmra.mrb[4].mxu0 %v922_v25  ;;  %2130 = vmatprep.subr.bf16.mxu1 %v2129_v10  ;;  %v2157_v10 = vpack.c.bf16 %v1005_v8, %v1004_v7  ;;  %v2165_v22 = vpack.c.bf16 %v1009_v20, %v1008_v19  ;;  %v1010_v25 = vld [vmem:[%s3043_s6 + $0x2b0] sm:$0xff]  ;;  %v2167_v27 = vpack.c.bf16 %v993_v24, %v992_v23 }
 0x221   :  { %v2169_v28 = vpack.c.bf16 %v1011_v26, %v1010_v25  ;;  %v2171_v33 = vpack.c.bf16 %v995_v30, %v994_v29 }
 0x223   :  { %2132 = vmatpush3.bf16.msra.mxu1 %v2131_v36  ;;  %v997_v36 = vld [vmem:[%s3043_s6 + $0x248] sm:$0xff] }
 0x224   :  { %2134 = vmatprep.subr.bf16.mxu1 %v2133_v38  ;;  %v1014_v38 = vld [vmem:[%s3043_s6 + $0x2d0] sm:$0xff] }
 0x225   :  { %v2177_v41 = vpack.c.bf16 %v1015_v39, %v1014_v38 }
 0x227   :  { %2136 = vmatpush3.bf16.msra.mxu1 %v2135_v43  ;;  %v999_v43 = vld [vmem:[%s3043_s6 + $0x258] sm:$0xff] }
 0x228   :  { %2138 = vmatprep.subr.bf16.mxu1 %v2137_v44  ;;  %v1016_v44 = vld [vmem:[%s3043_s6 + $0x2e0] sm:$0xff]  ;;  %v2179_v46 = vpack.c.bf16 %v999_v43, %v998_v42 }
 0x229   :  { %v2181_v47 = vpack.c.bf16 %v1017_v45, %v1016_v44 }
 0x22b   :  { %2140 = vmatpush3.bf16.msra.mxu1 %v2139_v49  ;;  %v1001_v49 = vld [vmem:[%s3043_s6 + $0x268] sm:$0xff] }
 0x22c   :  { %2142 = vmatprep.subr.bf16.mxu1 %v2141_v50  ;;  %v1018_v50 = vld [vmem:[%s3043_s6 + $0x2f0] sm:$0xff]  ;;  %v2183_v52 = vpack.c.bf16 %v1001_v49, %v1000_v48 }
 0x22d   :  { %v2185_v53 = vpack.c.bf16 %v1019_v51, %v1018_v50 }
 0x22f   :  { %2144 = vmatpush3.bf16.msra.mxu1 %v2143_v55  ;;  %v1003_v55 = vld [vmem:[%s3043_s6 + $0x278] sm:$0xff] }
 0x230   :  { %2146 = vmatprep.subr.bf16.mxu1 %v2145_v56  ;;  %v2187_v56 = vpack.c.bf16 %v1003_v55, %v1002_v54 }
 0x233   :  { %2148 = vmatpush3.bf16.msra.mxu1 %v2147_v61 }
 0x234   :  { %2150 = vmatprep.subr.bf16.mxu1 %v2149_v62 }
 0x237   :  { %2152 = vmatpush3.bf16.msra.mxu1 %v2151_v3 }
 0x238   :  { %2154 = vmatprep.subr.bf16.mxu1 %v2153_v4 }
 0x23b   :  { %2156 = vmatpush3.bf16.msra.mxu1 %v2155_v9 }
 0x23c   :  { %2158 = vmatprep.subr.bf16.mxu1 %v2157_v10 }
 0x23e   :  { %1194 = vmatmul.mubr.f32.vlgmr.msra.gmra.mrb[6].mxu1 %v2849_v32  ;;  %v1013_v32 = vld [vmem:[%s3043_s6 + $0x2c8] sm:$0xff] }
 0x23f   :  { %2160 = vmatpush3.bf16.msra.mxu1 %v2159_v15  ;;  %1263 = vmatprep.mubr.f32.mxu1 %v2852_v35  ;;  %v2173_v34 = vpack.c.bf16 %v1013_v32, %v1012_v31  ;;  %v996_v35 = vld [vmem:[%s3043_s6 + $0x240] sm:$0xff]  ;;  %s2258_s6 = smov [#allocation2]  }
 0x240   :  { %2162 = vmatprep.subr.bf16.mxu1 %v2161_v16  ;;  %v2175_v40 = vpack.c.bf16 %v997_v36, %v996_v35  ;;  %s1347_s11 = sshll.u32 %s2258_s6, 4  ;;  %s1348_s11 = int_to_ptr.vmem [resolvable:$true] %s1347_s11 }
 0x241   :  { %s2234_s12 = scalar_lea.vmem %s1348_s11, 32  ;;  %p2239_p1 = scmp.lt.s32.totalorder %s1348_s11, %s1348_s11 }
 0x242   :  { %p2235_p0 = scmp.ne.s32.totalorder %s1348_s11, %s2234_s12  ;;  %p2240_p2 = scmp.lt.s32.totalorder %s2234_s12, %s2234_s12 }
 0x243   :  { %2164 = vmatpush3.bf16.msra.mxu1 %v2163_v21 }
 0x244   :  { %2166 = vmatprep.subr.bf16.mxu1 %v2165_v22  ;;  %p2241_p3 = por %p2240_p2, %p2239_p1 }
 0x246   :  { %p2242_p4 = pnand %p2241_p3, %p2235_p0 }
 0x247   :  { %2168 = vmatpush3.bf16.msra.mxu1 %v2167_v27 }
 0x248   :  { %2170 = vmatprep.subr.bf16.mxu1 %v2169_v28 }
 0x24b   :  { %2172 = vmatpush3.bf16.msra.mxu1 %v2171_v33 }
 0x24c   :  { %2174 = vmatprep.subr.bf16.mxu1 %v2173_v34 }
 0x24f   :  { %2176 = vmatpush3.bf16.msra.mxu1 %v2175_v40 }
 0x250   :  { %2178 = vmatprep.subr.bf16.mxu1 %v2177_v41 }
 0x253   :  { %2180 = vmatpush3.bf16.msra.mxu1 %v2179_v46 }
 0x254   :  { %2182 = vmatprep.subr.bf16.mxu1 %v2181_v47 }
 0x257   :  { %2184 = vmatpush3.bf16.msra.mxu1 %v2183_v52 }
 0x258   :  { %2186 = vmatprep.subr.bf16.mxu1 %v2185_v53 }
 0x25b   :  { %2188 = vmatpush3.bf16.msra.mxu1 %v2187_v56 }
 0x25e   :  { %1264 = vmatmul.mubr.f32.vlgmr.msra.gmra.mrb[8].mxu1 %v2855_v37 }
 0x2f1   :  { %v1574_v57 = vpop.f32.mrb[4].mxu1 }
 0x2f2   :  { %v1575_v58 = vpop.f32.mrb[5].mxu1 }
 0x2f3   :  { %v1576_v59 = vadd.f32 %v1575_v58, %v1574_v57  ;;  %v1679_v60 = vpop.f32.mrb[4].mxu0 }
 0x2f4   :  { %v1680_v61 = vpop.f32.mrb[5].mxu0 }
 0x2f5   :  { %v1681_v62 = vadd.f32 %v1680_v61, %v1679_v60  ;;  %v1126_v2 = vadd.f32 %v1576_v59, %v1427_v63 }
 0x311   :  { %v1609_v0 = vpop.f32.mrb[6].mxu1 }
 0x312   :  { %v1610_v1 = vpop.f32.mrb[7].mxu1 }
 0x313   :  { %v1611_v3 = vadd.f32 %v1610_v1, %v1609_v0 }
 0x315   :  { %v1196_v4 = vadd.f32 %v1611_v3, %v1126_v2 }
 0x331   :  { %v1644_v5 = vpop.f32.mrb[8].mxu1 }
 0x332   :  { %v1645_v6 = vpop.f32.mrb[9].mxu1 }
 0x333   :  { %v1646_v7 = vadd.f32 %v1645_v6, %v1644_v5 }
 0x335   :  { %v1266_v37 = vadd.f32 %v1646_v7, %v1196_v4 }
 0x337   :  { %v1336_v8 = vadd.f32 %v1681_v62, %v1266_v37 }
 0x339   :  { %1340 = vst.msk [vmem:[#allocation2] sm:$0x3] %vm1339_vm4, %v1336_v8 }
 0x33a   :  { %2245 = shalt.err (!%p2242_p4)
}
 0x33b   :  { %s2246_s13 = scalar_lea.hbm %s3045_s8, 32 }
 0x33c   :  { %p2247_p5 = scmp.ne.s32.totalorder %s3045_s8, %s2246_s13  ;;  %p2250_p6 = scmp.lt.u32.totalorder %s2246_s13, %s3045_s8 }
 0x33e   :  { %p2252_p7 = pnand %p2250_p6, %p2247_p5 }
 0x340   :  { %2255 = shalt.err (!%p2252_p7)
}
 0x341   :  { %1350 = dma.vmem_to_hbm [thread:$0]  %s1348_s11, 32, %s3045_s8, [#allocation3]  }
 0x342   :  { %2256 = dma.done.wait [#allocation3], 32  }
 0x343   :  { %2257 = vsyncadd [#allocation3], 4294967264 }
 0x344   :  { %1354 = vsyncpa [#allocation3], 1 }

</bundles_post_ra>
